<compile_context>
chip_gen: v7x
topology: tpu7x:2x2x1
jax: 0.10.0
libtpu: 0.0.40
codegen_flags: <defaults>
</compile_context>

<pallas_src>
import jax
import jax.numpy as jnp
from jax.experimental import pallas as pl
from jax.experimental.pallas import tpu as pltpu

LANE = 128
MAX_TILE = 64 * 1024  # pixels per grid step


def _round_up(a, b):
    return -(-a // b) * b


def _sigmoid(v):
    # EUP-friendly sigmoid: one tanh (EUP slot) + 2 cheap VALU ops, full f32 accuracy.
    return 0.5 * jnp.tanh(0.5 * v) + 0.5


def _fused_kernel(x_ref, wcat_ref, bcat_ref, bres_ref, out_ref):
    # x_ref:    (3, T)   input pixels, channels on sublanes, pixels on lanes
    # wcat_ref: (16, 3)  rows 0..7: wres-scaled W1 (v1 path); rows 8..15: Weff@W1 (v8 path)
    # bcat_ref: (16, 1)  matching biases
    # bres_ref: (1,)     convres bias (SMEM scalar)
    # out_ref:  (1, T)
    x = x_ref[...]                     # (3, T)
    wcat = wcat_ref[...]               # (16, 3)
    bcat = bcat_ref[...]               # (16, 1)
    t = x.shape[-1]

    # [wres*v1 ; v8] = Wcat @ x + bcat, as broadcast multiply-adds on the VPU
    # (weight columns broadcast across pixel lanes, input rows across sublanes).
    acc = jnp.broadcast_to(bcat, (16, t))
    for k in range(3):                 # static, unrolled
        acc = acc + wcat[:, k:k + 1] * x[k:k + 1, :]

    lo = acc[0:8, :]                   # wres-scaled v1   (8, T)
    hi = acc[8:16, :]                  # v8               (8, T)

    # v11 = sum_c wres_c * v1_c * sigmoid(v8_c) + bres  (wres already folded into lo)
    v11 = jnp.sum(lo * _sigmoid(hi), axis=0, keepdims=True) + bres_ref[0]  # (1, T)
    v12 = _sigmoid(v11)
    out_ref[...] = v12 * v11           # lane-dense (1, T) store


def _choose_tiling(n, hw):
    """Pick (tile_hw, num_tiles, hw_pad).

    Prefers an exact (pad-free) tiling when H*W is lane-aligned, and at least two
    grid steps when batch == 1 so both v7x TensorCores get work.
    """
    hw128 = _round_up(hw, LANE)
    desired = max(1, -(-hw128 // MAX_TILE))
    if n == 1 and hw128 >= 2 * LANE:
        desired = max(desired, 2)
    if hw % LANE == 0:
        units = hw // LANE
        for nt in range(desired, min(units, 4 * desired) + 1):
            if units % nt == 0:
                return hw // nt, nt, hw           # exact tiling, no pad/copy
    # Fallback for non-lane-aligned (or awkward) H*W: pad the pixel axis.
    nt = desired
    tile_hw = _round_up(-(-hw128 // nt), LANE)
    return tile_hw, nt, tile_hw * nt


@jax.jit
def model_forward(x_nchw, params):
    """x_nchw: (N, 3, H, W) float32 -> (N, 1, H, W) float32."""
    n, c_in, h, w = x_nchw.shape
    assert c_in == 3
    hw = h * w

    w1, b1, ws, bs, wres, bres = params

    # ---- Fold conv2..conv8 into one affine map, fold with conv1, fold wres into v1 path. ----
    weff = jnp.eye(8, dtype=jnp.float32)
    beff = jnp.zeros((8,), jnp.float32)
    for i in range(7):
        weff = ws[i] @ weff
        beff = ws[i] @ beff + bs[i]
    w18 = weff @ w1                      # (8, 3): x -> v8 weights
    b18 = weff @ b1 + beff               # (8,)
    w1s = wres.reshape(8, 1) * w1        # (8, 3): wres-scaled conv1 weights
    b1s = wres.reshape(8) * b1           # (8,)

    wcat = jnp.concatenate([w1s, w18], axis=0)                  # (16, 3)
    bcat = jnp.concatenate([b1s, b18], axis=0).reshape(16, 1)   # (16, 1)
    bres1 = bres.reshape(1)                                     # SMEM scalar

    # ---- Tiling: pixels on the lane axis, large lane-dense tiles. ----
    tile_hw, num_tiles, hw_pad = _choose_tiling(n, hw)
    x3 = x_nchw.reshape(n, 3, hw)
    if hw_pad != hw:
        x3 = jnp.pad(x3, ((0, 0), (0, 0), (0, hw_pad - hw)))

    out = pl.pallas_call(
        _fused_kernel,
        out_shape=jax.ShapeDtypeStruct((n, 1, hw_pad), jnp.float32),
        grid=(n, num_tiles),
        in_specs=[
            pl.BlockSpec((None, 3, tile_hw), lambda i, j: (i, 0, j)),   # x tile -> (3, T)
            pl.BlockSpec((16, 3), lambda i, j: (0, 0)),                 # wcat
            pl.BlockSpec((16, 1), lambda i, j: (0, 0)),                 # bcat
            pl.BlockSpec(memory_space=pltpu.MemorySpace.SMEM),          # bres scalar
        ],
        out_specs=pl.BlockSpec((None, 1, tile_hw), lambda i, j: (i, 0, j)),
        compiler_params=pltpu.CompilerParams(
            dimension_semantics=("parallel", "parallel"),
            vmem_limit_bytes=48 * 1024 * 1024),
    )(x3, wcat, bcat, bres1)

    if hw_pad != hw:
        out = out[:, :, :hw]
    return out.reshape(n, 1, h, w)


def init_params(key):
    """Deterministic params matching the PyTorch module's shapes.

    Conv2d(out, in, 1, 1) weights are stored as (out, in) matrices; biases as (out,).
    """
    keys = jax.random.split(key, 20)

    def uniform(k, shape, fan_in):
        bound = 1.0 / jnp.sqrt(float(fan_in))
        return jax.random.uniform(k, shape, jnp.float32, -bound, bound)

    w1 = uniform(keys[0], (8, 3), 3)
    b1 = uniform(keys[1], (8,), 3)
    ws = jnp.stack([uniform(keys[2 + i], (8, 8), 8) for i in range(7)])
    bs = jnp.stack([uniform(keys[9 + i], (8,), 8) for i in range(7)])
    wres = uniform(keys[16], (1, 8), 8)
    bres = uniform(keys[17], (1,), 8)
    return (w1, b1, ws, bs, wres, bres)


def reference_forward(x_nchw, params):
    """Pure-JAX reference with the original (unfolded) conv chain."""
    w1, b1, ws, bs, wres, bres = params
    n, c, h, w = x_nchw.shape
    x = x_nchw.reshape(n, c, h * w)
    v1 = jnp.einsum('oc,nct->not', w1, x) + b1[None, :, None]
    v = v1
    for i in range(7):
        v = jnp.einsum('oc,nct->not', ws[i], v) + bs[i][None, :, None]
    v9 = jax.nn.sigmoid(v)
    v10 = v1 * v9
    v11 = jnp.einsum('oc,nct->not', wres, v10) + bres[None, :, None]
    v12 = jax.nn.sigmoid(v11)
    return (v12 * v11).reshape(n, 1, h, w)


if __name__ == "__main__":
    key = jax.random.PRNGKey(0)
    k_x, k_p = jax.random.split(key)

    # Small shapes consistent with the module (original input was (1, 3, 64, 64)).
    x = jax.random.normal(k_x, (2, 3, 16, 16), jnp.float32)
    params = init_params(k_p)

    out = jax.block_until_ready(model_forward(x, params))
    ref = reference_forward(x, params)

    assert out.shape == (2, 1, 16, 16), out.shape
    # Folding the linear chain (and wres) reassociates FP sums; tolerance reflects that.
    assert jnp.allclose(out, ref, atol=1e-4, rtol=1e-4), "mismatch vs reference"

    print("KERNEL_OK")
</pallas_src>

<mosaic_0001>
module attributes {stable_mosaic.version = 11 : i64} {
  func.func @_fused_kernel(%arg0: i32, %arg1: i32, %arg2: memref<1x3x256xf32, #tpu.memory_space<vmem>>, %arg3: memref<16x3xf32, #tpu.memory_space<vmem>>, %arg4: memref<16x1xf32, #tpu.memory_space<vmem>>, %arg5: memref<1xf32, #tpu.memory_space<smem>>, %arg6: memref<1x1x256xf32, #tpu.memory_space<vmem>>) attributes {dimension_semantics = [#tpu.dimension_semantics<parallel>, #tpu.dimension_semantics<parallel>], iteration_bounds = array<i64: 2, 1>, scalar_prefetch = 0 : i64, scratch_operands = 0 : i64, tpu.core_type = #tpu.core_type<tc>, window_params = [{transform_indices = @transform_0, window_bounds = array<i64: 1, 3, 256>}, {pipeline_mode = #tpu.pipeline_mode<synchronous>, transform_indices = @transform_1, window_bounds = array<i64: 16, 3>}, {pipeline_mode = #tpu.pipeline_mode<synchronous>, transform_indices = @transform_2, window_bounds = array<i64: 16, 1>}, {transform_indices = @transform_3, window_bounds = array<i64: 1>}, {transform_indices = @transform_4, window_bounds = array<i64: 1, 1, 256>}]} {
    %c0 = arith.constant 0 : index
    %c0_0 = arith.constant 0 : index
    %c0_1 = arith.constant 0 : index
    %0 = vector.load %arg2[%c0, %c0_0, %c0_1] : memref<1x3x256xf32, #tpu.memory_space<vmem>>, vector<1x3x256xf32>
    %1 = vector.shape_cast %0 : vector<1x3x256xf32> to vector<3x256xf32>
    %c0_2 = arith.constant 0 : index
    %c0_3 = arith.constant 0 : index
    %2 = vector.load %arg3[%c0_2, %c0_3] : memref<16x3xf32, #tpu.memory_space<vmem>>, vector<16x3xf32>
    %c0_4 = arith.constant 0 : index
    %c0_5 = arith.constant 0 : index
    %3 = vector.load %arg4[%c0_4, %c0_5] : memref<16x1xf32, #tpu.memory_space<vmem>>, vector<16x1xf32>
    %4 = vector.shape_cast %3 : vector<16x1xf32> to vector<16x1xf32>
    %5 = vector.broadcast %4 : vector<16x1xf32> to vector<16x256xf32>
    %6 = vector.extract_strided_slice %2 {offsets = [0, 0], sizes = [16, 1], strides = [1, 1]} : vector<16x3xf32> to vector<16x1xf32>
    %7 = vector.extract_strided_slice %1 {offsets = [0, 0], sizes = [1, 256], strides = [1, 1]} : vector<3x256xf32> to vector<1x256xf32>
    %8 = vector.broadcast %6 : vector<16x1xf32> to vector<16x256xf32>
    %9 = vector.broadcast %7 : vector<1x256xf32> to vector<16x256xf32>
    %10 = arith.mulf %8, %9 : vector<16x256xf32>
    %11 = arith.addf %5, %10 : vector<16x256xf32>
    %12 = vector.extract_strided_slice %2 {offsets = [0, 1], sizes = [16, 1], strides = [1, 1]} : vector<16x3xf32> to vector<16x1xf32>
    %13 = vector.extract_strided_slice %1 {offsets = [1, 0], sizes = [1, 256], strides = [1, 1]} : vector<3x256xf32> to vector<1x256xf32>
    %14 = vector.broadcast %12 : vector<16x1xf32> to vector<16x256xf32>
    %15 = vector.broadcast %13 : vector<1x256xf32> to vector<16x256xf32>
    %16 = arith.mulf %14, %15 : vector<16x256xf32>
    %17 = arith.addf %11, %16 : vector<16x256xf32>
    %18 = vector.extract_strided_slice %2 {offsets = [0, 2], sizes = [16, 1], strides = [1, 1]} : vector<16x3xf32> to vector<16x1xf32>
    %19 = vector.extract_strided_slice %1 {offsets = [2, 0], sizes = [1, 256], strides = [1, 1]} : vector<3x256xf32> to vector<1x256xf32>
    %20 = vector.broadcast %18 : vector<16x1xf32> to vector<16x256xf32>
    %21 = vector.broadcast %19 : vector<1x256xf32> to vector<16x256xf32>
    %22 = arith.mulf %20, %21 : vector<16x256xf32>
    %23 = arith.addf %17, %22 : vector<16x256xf32>
    %24 = vector.extract_strided_slice %23 {offsets = [0, 0], sizes = [8, 256], strides = [1, 1]} : vector<16x256xf32> to vector<8x256xf32>
    %25 = vector.extract_strided_slice %23 {offsets = [8, 0], sizes = [8, 256], strides = [1, 1]} : vector<16x256xf32> to vector<8x256xf32>
    %cst = arith.constant 5.000000e-01 : f32
    %26 = vector.broadcast %cst : f32 to vector<8x256xf32>
    %27 = arith.mulf %26, %25 : vector<8x256xf32>
    %28 = math.tanh %27 : vector<8x256xf32>
    %cst_6 = arith.constant 5.000000e-01 : f32
    %29 = vector.broadcast %cst_6 : f32 to vector<8x256xf32>
    %30 = arith.mulf %29, %28 : vector<8x256xf32>
    %cst_7 = arith.constant 5.000000e-01 : f32
    %31 = vector.broadcast %cst_7 : f32 to vector<8x256xf32>
    %32 = arith.addf %30, %31 : vector<8x256xf32>
    %33 = arith.mulf %24, %32 : vector<8x256xf32>
    %cst_8 = arith.constant dense<0.000000e+00> : vector<256xf32>
    %34 = vector.multi_reduction <add>, %33, %cst_8 [0] : vector<8x256xf32> to vector<256xf32>
    %35 = vector.shape_cast %34 : vector<256xf32> to vector<1x256xf32>
    %c0_9 = arith.constant 0 : index
    %36 = memref.load %arg5[%c0_9] : memref<1xf32, #tpu.memory_space<smem>>
    %37 = vector.broadcast %36 : f32 to vector<1x256xf32>
    %38 = arith.addf %35, %37 : vector<1x256xf32>
    %cst_10 = arith.constant 5.000000e-01 : f32
    %39 = vector.broadcast %cst_10 : f32 to vector<1x256xf32>
    %40 = arith.mulf %39, %38 : vector<1x256xf32>
    %41 = math.tanh %40 : vector<1x256xf32>
    %cst_11 = arith.constant 5.000000e-01 : f32
    %42 = vector.broadcast %cst_11 : f32 to vector<1x256xf32>
    %43 = arith.mulf %42, %41 : vector<1x256xf32>
    %cst_12 = arith.constant 5.000000e-01 : f32
    %44 = vector.broadcast %cst_12 : f32 to vector<1x256xf32>
    %45 = arith.addf %43, %44 : vector<1x256xf32>
    %46 = arith.mulf %45, %38 : vector<1x256xf32>
    %c0_13 = arith.constant 0 : index
    %c0_14 = arith.constant 0 : index
    %c0_15 = arith.constant 0 : index
    %47 = vector.load %arg6[%c0_13, %c0_14, %c0_15] : memref<1x1x256xf32, #tpu.memory_space<vmem>>, vector<1x1x256xf32>
    %48 = vector.shape_cast %47 : vector<1x1x256xf32> to vector<1x256xf32>
    %49 = vector.shape_cast %46 : vector<1x256xf32> to vector<1x1x256xf32>
    tpu.vector_store %arg6[%c0_13, %c0_14, %c0_15], %49 {strides = array<i32>} : memref<1x1x256xf32, #tpu.memory_space<vmem>>, vector<1x1x256xf32>,
    return
  }
  func.func @transform_0(%arg0: i32, %arg1: i32) -> (i32, i32, i32) {
    %c0_i32 = arith.constant 0 : i32
    %c0_i32_0 = arith.constant 0 : i32
    return %arg0, %c0_i32, %arg1 : i32, i32, i32
  }
  func.func @transform_1(%arg0: i32, %arg1: i32) -> (i32, i32) {
    %c0_i32 = arith.constant 0 : i32
    %c0_i32_0 = arith.constant 0 : i32
    %c0_i32_1 = arith.constant 0 : i32
    return %c0_i32, %c0_i32_0 : i32, i32
  }
  func.func @transform_2(%arg0: i32, %arg1: i32) -> (i32, i32) {
    %c0_i32 = arith.constant 0 : i32
    %c0_i32_0 = arith.constant 0 : i32
    %c0_i32_1 = arith.constant 0 : i32
    return %c0_i32, %c0_i32_0 : i32, i32
  }
  func.func @transform_3(%arg0: i32, %arg1: i32) -> i32 {
    %c0_i32 = arith.constant 0 : i32
    %c0_i32_0 = arith.constant 0 : i32
    return %c0_i32 : i32
  }
  func.func @transform_4(%arg0: i32, %arg1: i32) -> (i32, i32, i32) {
    %c0_i32 = arith.constant 0 : i32
    %c0_i32_0 = arith.constant 0 : i32
    return %arg0, %c0_i32, %arg1 : i32, i32, i32
  }
}

</mosaic_0001>

<bundles_post_ra>
// kernel: model_forward.1
= control target key start
LH: loop header
LB: loop body
LE: loop exit
PB: predicated region body
PF: predicated region fallthrough
CT: control target
= control target key end

     0   :  { %s606_s17 = smov 0   ;;  %s608_s18 = smov 0   ;;  %s670_s0 = inlined_call_operand.vmem [shape: f32[2,3,256], index: 0, kind: input, shape index: {}]   ;;  %s671_s1 = inlined_call_operand.vmem [shape: f32[16,3], index: 1, kind: input, shape index: {}]   ;;  %s672_s2 = inlined_call_operand.vmem [shape: f32[16,1], index: 2, kind: input, shape index: {}]   ;;  %s673_s3 = inlined_call_operand.<no memory space> [shape: f32[1], index: 3, kind: input, shape index: {}]   ;;  %s674_s4 = inlined_call_operand.vmem [shape: f32[2,1,256], index: 4, kind: output, shape index: {}]  }
   0x1   :  { %9 = sst [smem:[#allocation2]] %s673_s3  ;;  %s610_s19 = smov 0  }
   0x2 LB: > { %s27_s3 = sadd.s32 1, %s568_s18  ;;  %p500_p0 = scmp.ge.s32.totalorder %s572_s19, 1  ;;  %s572_s19 = sphi %s610_s19, %s15_s19   ;;  %s568_s18 = sphi %s608_s18, %s676_s18   ;;  %s564_s17 = sphi %s606_s17, %s675_s17  }
   0x3   : > { %p29_p1 = scmp.ge.s32.totalorder %s27_s3, 2  ;;  %p184_p2 = scmp.lt.s32.totalorder %s572_s19, 3 }
   0x5   : > { %s678_s3 = smov (%p29_p1, %s27_s3), 0  ;;  %p185_p3 = pnand %p500_p0, %p184_p2 }
   0x6   : > { %v238_v0 = vld [vmem:[%s671_s1 + $0x8] sm:$0xff] (!%p185_p3)  ;;  %v574_v1 = vmov (!%p185_p3), 1   ;;  %v575_v2 = vmov (!%p185_p3), 0   ;;  %v576_v4 = vmov (!%p185_p3), 2   ;;  %v237_v5 = vld [vmem:[%s671_s1] sm:$0xff] (!%p185_p3)  ;;  %p218_p4 = scmp.lt.s32.totalorder (!%p185_p3), %s564_s17, 1  ;;  %v262_v7 = vlaneseq (!%p185_p3) }
   0x7   : > { %188 = sbr.rel (%p185_p3) target bundleno = 206 (0xce), region = 36  ;;  %536 = vset.pattern.permute.xlu1 (!%p185_p3), %v574_v1  ;;  %535 = vset.pattern.permute.xlu0 (!%p185_p3), %v575_v2  ;;  %v240_v3 = vld [vmem:[%s672_s2 + $0x8] sm:$0xff] (!%p185_p3)  ;;  %v239_v6 = vld [vmem:[%s672_s2] sm:$0xff] (!%p185_p3)  ;;  %s378_s6 = sld [smem:[#allocation2]] (!%p185_p3) }
   0x8   : > { %293 = vperm.xlu1 (!%p185_p3), %536, %v238_v0   ;;  %258 = vperm.xlu0 (!%p185_p3), %535, %v238_v0   ;;  %v644_v8 = vshrl.u32 (!%p185_p3), %v262_v7, 7  ;;  %vm412_vm0 = vcmp.lt.s32.totalorder (!%p185_p3), %v262_v7, 256 }
   0xa   : > { %v264_v9 = vsub.s32 (!%p185_p3), 0, %v644_v8  ;;  %v268_v10 = vsub.s32 (!%p185_p3), 4, %v644_v8  ;;  %v298_v12 = vsub.s32 (!%p185_p3), 1, %v644_v8  ;;  %v302_v13 = vsub.s32 (!%p185_p3), 5, %v644_v8 }
   0xb   : > { %v332_v14 = vsub.s32 (!%p185_p3), 2, %v644_v8  ;;  %v336_v15 = vsub.s32 (!%p185_p3), 6, %v644_v8 }
   0xc   : > { %537 = vset.pattern.permute.xlu1 (!%p185_p3), %v576_v4  ;;  %248 = vperm.xlu0 (!%p185_p3), %535, %v240_v3  }
   0xd   : > { %327 = vperm.xlu1 (!%p185_p3), %537, %v238_v0  }
   0xe   : > { %s680_s17 = smov (!%p218_p4, %s564_s17), 1 }
   0xf   : > { %s506_s28 = sshll.u32 %s680_s17, 3  ;;  %s503_s7 = sshll.u32 %s680_s17, 1 }
  0x10   : > { %253 = vperm.xlu0 %535, %v237_v5   ;;  %s225_s5 = scalar_lea.vmem %s670_s0, %s506_s28  ;;  %s234_s10 = scalar_lea.vmem %s674_s4, %s503_s7 }
  0x11   : > { %538 = vset.pattern.permute.xlu1 %v575_v2  ;;  %v236_v11 = vld [vmem:[%s225_s5] sm:$0x77] }
  0x12   : > { %243 = vperm.xlu1 %538, %v239_v6   ;;  %v265_v16 = vrot.slane %v236_v11, %v264_v9  ;;  %v269_v17 = vrot.slane %v236_v11, %v268_v10  ;;  %v299_v18 = vrot.slane %v236_v11, %v298_v12  ;;  %v303_v19 = vrot.slane %v236_v11, %v302_v13 }
  0x13   : > { %v333_v20 = vrot.slane %v236_v11, %v332_v14  ;;  %v337_v21 = vrot.slane %v236_v11, %v336_v15 }
  0x14   : > { %539 = vset.pattern.permute.xlu0 %v574_v1  ;;  %v275_v22 = vrot.slane %v265_v16, %v264_v9  ;;  %v279_v23 = vrot.slane %v269_v17, %v264_v9  ;;  %v309_v26 = vrot.slane %v299_v18, %v298_v12  ;;  %v313_v27 = vrot.slane %v303_v19, %v298_v12 }
  0x15   : > { %289 = vperm.xlu0 %539, %v237_v5   ;;  %v343_v28 = vrot.slane %v333_v20, %v332_v14  ;;  %v347_v29 = vrot.slane %v337_v21, %v332_v14  ;;  %v379_v17 = vstv %s378_s6 }
  0x16   : > { %540 = vset.pattern.permute.xlu1 %v576_v4 }
  0x17   : > { %323 = vperm.xlu1 %540, %v237_v5  }
  0x19   : > { %541 = vset.pattern.permute.xlu0 %v576_v4 }
  0x87   : > { %v259_v24 = vpop.permute.xlu0 %258  ;;  %v294_v25 = vpop.permute.xlu1 %293 }
  0x88   : > { %v282_v30 = vmul.f32 %v275_v22, %v259_v24  ;;  %v283_v31 = vmul.f32 %v279_v23, %v259_v24  ;;  %v316_v33 = vmul.f32 %v309_v26, %v294_v25  ;;  %v317_v34 = vmul.f32 %v313_v27, %v294_v25 }
  0x89   : > { %v577_v25 = vmov 1966171168  }
  0x8b   : > { %v249_v32 = vpop.permute.xlu0 %248 }
  0x8c   : > { %v286_v35 = vadd.f32 %v282_v30, %v249_v32  ;;  %v287_v36 = vadd.f32 %v283_v31, %v249_v32  ;;  %v328_v37 = vpop.permute.xlu1 %327 }
  0x8d   : > { %v350_v38 = vmul.f32 %v343_v28, %v328_v37  ;;  %v351_v39 = vmul.f32 %v347_v29, %v328_v37 }
  0x8e   : > { %v320_v40 = vadd.f32 %v316_v33, %v286_v35  ;;  %v321_v41 = vadd.f32 %v317_v34, %v287_v36 }
  0x8f   : > { %v254_v44 = vpop.permute.xlu0 %253 }
  0x90   : > { %v354_v42 = vadd.f32 %v350_v38, %v320_v40  ;;  %v355_v43 = vadd.f32 %v351_v39, %v321_v41  ;;  %v280_v49 = vmul.f32 %v275_v22, %v254_v44  ;;  %v281_v50 = vmul.f32 %v279_v23, %v254_v44 }
  0x91   : > { %v244_v47 = vpop.permute.xlu1 %243 }
  0x92   : > { %v356_v45 = vmul.f32 0.5, %v354_v42  ;;  %v357_v46 = vmul.f32 0.5, %v355_v43  ;;  %v284_v54 = vadd.f32 %v280_v49, %v244_v47  ;;  %v285_v55 = vadd.f32 %v281_v50, %v244_v47 }
  0x94   : > { %542 = vtanh.f32 %v356_v45  ;;  %v290_v48 = vpop.permute.xlu0 %289 }
  0x95   : > { %544 = vtanh.f32 %v357_v46  ;;  %v314_v51 = vmul.f32 %v309_v26, %v290_v48  ;;  %v315_v52 = vmul.f32 %v313_v27, %v290_v48  ;;  %v396_v26 = vunpack.c.l.s4 %v577_v25 }
  0x96   : > { %v324_v53 = vpop.permute.xlu1 %323 }
  0x97   : > { %v318_v56 = vadd.f32 %v314_v51, %v284_v54  ;;  %v348_v57 = vmul.f32 %v343_v28, %v324_v53  ;;  %v319_v59 = vadd.f32 %v315_v52, %v285_v55  ;;  %v349_v60 = vmul.f32 %v347_v29, %v324_v53 }
  0x98   : > { %v397_v30 = vunpack.c.0.s8 %v396_v26 }
  0x99   : > { %v352_v0 = vadd.f32 %v348_v57, %v318_v56  ;;  %v353_v2 = vadd.f32 %v349_v60, %v319_v59 }
  0x9a   : > { %v400_v35 = vsub.s32 %v397_v30, %v644_v8 }
  0x9e   : > { %v543_v58 = vpop.eup %542 }
  0x9f   : > { %v545_v61 = vpop.eup %544  ;;  %v360_v62 = vmul.f32 0.5, %v543_v58 }
  0xa0   : > { %v361_v63 = vmul.f32 0.5, %v545_v61 }
  0xa1   : > { %v362_v1 = vadd.f32 0.5, %v360_v62 }
  0xa2   : > { %v363_v3 = vadd.f32 0.5, %v361_v63 }
  0xa3   : > { %v364_v4 = vmul.f32 %v362_v1, %v352_v0 }
  0xa4   : > { %v365_v5 = vmul.f32 %v363_v3, %v353_v2 }
  0xa5   : > { %v366_v6 = vrot.slane %v364_v4, 4 }
  0xa6   : > { %v372_v9 = vrot.slane %v365_v5, 4 }
  0xa7   : > { %v367_v10 = vadd.f32 %v366_v6, %v364_v4 }
  0xa8   : > { %v373_v11 = vadd.f32 %v372_v9, %v365_v5 }
  0xa9   : > { %v368_v12 = vrot.slane %v367_v10, 2 }
  0xaa   : > { %v374_v13 = vrot.slane %v373_v11, 2 }
  0xab   : > { %v369_v14 = vadd.f32 %v368_v12, %v367_v10 }
  0xac   : > { %v375_v15 = vadd.f32 %v374_v13, %v373_v11 }
  0xad   : > { %v370_v16 = vrot.slane %v369_v14, 1 }
  0xae   : > { %v376_v18 = vrot.slane %v375_v15, 1 }
  0xaf   : > { %v371_v19 = vadd.f32 %v370_v16, %v369_v14 }
  0xb0   : > { %v377_v20 = vadd.f32 %v376_v18, %v375_v15 }
  0xb1   : > { %v380_v21 = vadd.f32 %v379_v17, %v371_v19 }
  0xb2   : > { %v381_v22 = vadd.f32 %v379_v17, %v377_v20 }
  0xb3   : > { %v382_v23 = vmul.f32 0.5, %v380_v21 }
  0xb4   : > { %v383_v24 = vmul.f32 0.5, %v381_v22 }
  0xb5   : > { %546 = vtanh.f32 %v382_v23 }
  0xb6   : > { %548 = vtanh.f32 %v383_v24 }
  0xbf   : > { %v547_v27 = vpop.eup %546 }
  0xc0   : > { %v549_v28 = vpop.eup %548  ;;  %v386_v29 = vmul.f32 0.5, %v547_v27 }
  0xc1   : > { %v387_v31 = vmul.f32 0.5, %v549_v28 }
  0xc2   : > { %v388_v32 = vadd.f32 0.5, %v386_v29 }
  0xc3   : > { %v389_v33 = vadd.f32 0.5, %v387_v31 }
  0xc4   : > { %v390_v34 = vmul.f32 %v388_v32, %v380_v21 }
  0xc5   : > { %v391_v36 = vmul.f32 %v389_v33, %v381_v22 }
  0xc7   : > { %v394_v37 = vcombine.low %v390_v34, %v391_v36 }
  0xc9   : > { %v401_v38 = vrot.slane %v394_v37, %v400_v35 }
  0xcb   : > { %v408_v39 = vrot.slane %v401_v38, %v400_v35 }
  0xcd   : > { %414 = vst.msk [vmem:[%s234_s10] sm:$0x3] %vm412_vm0, %v408_v39 }
  0xce PF: > { %s15_s19 = sadd.s32 1, %s572_s19   ;;  %s675_s17 = smov %s568_s18 }
  0xcf   : > { %p12_p5 = scmp.ge.s32.totalorder %s15_s19, 4   ;;  %s676_s18 = smov %s678_s3 }
  0xd1   :  { %14 = sbr.rel (!%p12_p5) target bundleno = 2 (0x2), region = 66 }

</bundles_post_ra>
